<compile_context>
chip_gen: v5e
topology: v5e:2x2
jax: 0.10.0
libtpu: 0.0.40
codegen_flags: <defaults>
</compile_context>

<pallas_src>
import functools

import jax
import jax.numpy as jnp
from jax.experimental import pallas as pl
from jax.experimental.pallas import tpu as pltpu


def _se_fused_kernel(x_ref, w1_ref, b1_ref, w2_ref, b2_ref, o_ref, *, inv_hw):
    """One grid step = TB batch elements, full spatial extent resident."""
    x = x_ref[...].astype(jnp.float32)                       # (TB, C, HW)
    pooled = jnp.sum(x, axis=-1) * inv_hw                    # (TB, C) lane reduce (XLU)
    h = jnp.dot(pooled, w1_ref[...], preferred_element_type=jnp.float32) + b1_ref[...]
    h = jnp.maximum(h, 0.0)
    z = jnp.dot(h, w2_ref[...], preferred_element_type=jnp.float32) + b2_ref[...]
    sw = pl.reciprocal(1.0 + jnp.exp(-z), approx=True)       # sigmoid on EUP
    o_ref[...] = (x * sw[:, :, None]).astype(o_ref.dtype)


def _se_split_kernel(x_ref, w1_ref, b1_ref, w2_ref, b2_ref, o_ref,
                     sum_ref, sw_ref, *, inv_hw):
    """Two passes over spatial tiles: pass 0 = reduce, pass 1 = scale."""
    p = pl.program_id(1)
    s = pl.program_id(2)
    ns = pl.num_programs(2)

    @pl.when(jnp.logical_and(p == 0, s == 0))
    def _():
        sum_ref[...] = jnp.zeros_like(sum_ref)

    @pl.when(p == 0)
    def _():
        sum_ref[...] += jnp.sum(x_ref[...].astype(jnp.float32), axis=-1)

    @pl.when(jnp.logical_and(p == 0, s == ns - 1))
    def _():
        pooled = sum_ref[...] * inv_hw                       # (1, C)
        h = jnp.dot(pooled, w1_ref[...], preferred_element_type=jnp.float32) + b1_ref[...]
        h = jnp.maximum(h, 0.0)
        z = jnp.dot(h, w2_ref[...], preferred_element_type=jnp.float32) + b2_ref[...]
        sw_ref[...] = pl.reciprocal(1.0 + jnp.exp(-z), approx=True)

    @pl.when(p == 1)
    def _():
        x = x_ref[...].astype(jnp.float32)
        o_ref[...] = (x * sw_ref[...][:, :, None]).astype(o_ref.dtype)


def _largest_divisor_leq(n, cap):
    cap = int(max(1, min(n, cap)))
    for d in range(cap, 0, -1):
        if n % d == 0:
            return d
    return 1


def _vmem_limit_bytes(footprint):
    # Above v5e's 16 MiB default scoped limit, below v7x's 64 MiB physical VMEM.
    return int(min(max(32 << 20, footprint + (8 << 20)), 56 << 20))


def se_block(x, w1t, b1, w2t, b2, *,
             vmem_budget_bytes=40 << 20,
             force_split=False,
             spatial_tile=None):
    """SEBlock forward.

    x   : (B, C, H, W)  activation (f32 or bf16)
    w1t : (C, mid)  fc1.weight.T     b1 : (1, mid)  fc1.bias
    w2t : (mid, C)  fc2.weight.T     b2 : (1, C)    fc2.bias
    """
    B, C, H, W = x.shape
    HW = H * W
    mid = w1t.shape[1]

    # Pad the squeeze dim up to a sublane multiple; zero pads are exact no-ops
    # through relu/fc2, and the tiny MLP tiles stop being awkward sub-(8,128) shapes.
    mid_p = max(8, -(-mid // 8) * 8)
    if mid_p != mid:
        w1t = jnp.pad(w1t, ((0, 0), (0, mid_p - mid)))
        b1 = jnp.pad(b1, ((0, 0), (0, mid_p - mid)))
        w2t = jnp.pad(w2t, ((0, mid_p - mid), (0, 0)))

    # Lane-dense layout: collapse H, W (free reshape for contiguous NCHW).
    x3 = x.reshape(B, C, HW)
    itemsize = jnp.dtype(x.dtype).itemsize
    blk_bytes = C * HW * itemsize                            # one batch element (in or out)
    w_bytes = 2 * 4 * (C * mid_p + mid_p + mid_p * C + C)    # double-buffered params
    inv_hw = 1.0 / float(HW)

    use_split = bool(force_split)
    if not use_split:
        # in + out blocks, each double-buffered by the pipeline.
        max_tb = vmem_budget_bytes // (4 * blk_bytes)
        if max_tb < 1 and HW % 128 == 0 and HW > 128:
            use_split = True

    if not use_split:
        tb = _largest_divisor_leq(B, max(1, max_tb))
        # Keep >= 2 parallel grid steps when blocks are already big so both
        # v7x TensorCores get work (for tiny problems, fold everything into one step).
        if B > 1 and B // tb == 1 and tb * blk_bytes >= (4 << 20):
            tb = _largest_divisor_leq(B, B // 2)
        footprint = 4 * tb * blk_bytes + w_bytes

        out3 = pl.pallas_call(
            functools.partial(_se_fused_kernel, inv_hw=inv_hw),
            out_shape=jax.ShapeDtypeStruct((B, C, HW), x.dtype),
            grid_spec=pltpu.PrefetchScalarGridSpec(
                num_scalar_prefetch=0,
                grid=(B // tb,),
                in_specs=[
                    pl.BlockSpec((tb, C, HW), lambda i: (i, 0, 0)),
                    pl.BlockSpec((C, mid_p), lambda i: (0, 0)),
                    pl.BlockSpec((1, mid_p), lambda i: (0, 0)),
                    pl.BlockSpec((mid_p, C), lambda i: (0, 0)),
                    pl.BlockSpec((1, C), lambda i: (0, 0)),
                ],
                out_specs=pl.BlockSpec((tb, C, HW), lambda i: (i, 0, 0)),
            ),
            compiler_params=pltpu.CompilerParams(
                dimension_semantics=("parallel",),
                vmem_limit_bytes=_vmem_limit_bytes(footprint)),
        )(x3, w1t, b1, w2t, b2)
        return out3.reshape(B, C, H, W)

    # ---- Fallback: a single batch element does not fit the VMEM budget.
    # Split the spatial axis; pass 0 reduces into persistent VMEM scratch,
    # pass 1 applies the per-channel scale tile by tile.
    if spatial_tile is not None:
        ts = int(spatial_tile)
    else:
        cands = [d for d in range(128, HW + 1, 128) if HW % d == 0] or [HW]
        fits = [d for d in cands if 4 * C * d * itemsize <= vmem_budget_bytes]
        ts = max(fits) if fits else min(cands)
    assert HW % ts == 0 and (ts % 128 == 0 or ts == HW), "bad spatial tile"

    footprint = 4 * C * ts * itemsize + w_bytes + 2 * 4 * C
    out3 = pl.pallas_call(
        functools.partial(_se_split_kernel, inv_hw=inv_hw),
        out_shape=jax.ShapeDtypeStruct((B, C, HW), x.dtype),
        grid_spec=pltpu.PrefetchScalarGridSpec(
            num_scalar_prefetch=0,
            grid=(B, 2, HW // ts),
            in_specs=[
                pl.BlockSpec((1, C, ts), lambda b, p, s: (b, 0, s)),
                pl.BlockSpec((C, mid_p), lambda b, p, s: (0, 0)),
                pl.BlockSpec((1, mid_p), lambda b, p, s: (0, 0)),
                pl.BlockSpec((mid_p, C), lambda b, p, s: (0, 0)),
                pl.BlockSpec((1, C), lambda b, p, s: (0, 0)),
            ],
            out_specs=pl.BlockSpec((1, C, ts), lambda b, p, s: (b, 0, s)),
            scratch_shapes=[pltpu.VMEM((1, C), jnp.float32),   # channel sums
                            pltpu.VMEM((1, C), jnp.float32)],  # SE weights
        ),
        compiler_params=pltpu.CompilerParams(
            dimension_semantics=("parallel", "arbitrary", "arbitrary"),
            vmem_limit_bytes=_vmem_limit_bytes(footprint)),
    )(x3, w1t, b1, w2t, b2)
    return out3.reshape(B, C, H, W)


def se_block_ref(x, w1t, b1, w2t, b2):
    pooled = jnp.mean(x, axis=(2, 3))                        # (B, C)
    h = jnp.maximum(pooled @ w1t + b1, 0.0)                  # (B, mid)
    s = jax.nn.sigmoid(h @ w2t + b2)                         # (B, C)
    return x * s[:, :, None, None]


if __name__ == "__main__":
    B, C, H, W = 2, 64, 16, 16
    r = 16
    mid = C // r  # 4

    key = jax.random.PRNGKey(0)
    kx, k1, kb1, k2, kb2 = jax.random.split(key, 5)

    x = jax.random.normal(kx, (B, C, H, W), dtype=jnp.float32)

    # Deterministic parameter init (PyTorch Linear stores (out, in); we pass transposed).
    bound1 = 1.0 / jnp.sqrt(C)
    w1t = jax.random.uniform(k1, (C, mid), jnp.float32, -bound1, bound1)   # fc1.weight.T
    b1 = jax.random.uniform(kb1, (1, mid), jnp.float32, -bound1, bound1)   # fc1.bias
    bound2 = 1.0 / jnp.sqrt(mid)
    w2t = jax.random.uniform(k2, (mid, C), jnp.float32, -bound2, bound2)   # fc2.weight.T
    b2 = jax.random.uniform(kb2, (1, C), jnp.float32, -bound2, bound2)     # fc2.bias

    ref = se_block_ref(x, w1t, b1, w2t, b2)

    # Main (fused, lane-dense, batch-tiled) path.
    out = jax.block_until_ready(se_block(x, w1t, b1, w2t, b2))
    assert out.shape == (B, C, H, W)
    assert jnp.allclose(out, ref, atol=1e-2, rtol=1e-2), "fused kernel mismatch vs reference"

    # Exercise the large-activation fallback (two-pass spatial split) at small shape.
    out_split = jax.block_until_ready(
        se_block(x, w1t, b1, w2t, b2, force_split=True, spatial_tile=128))
    assert jnp.allclose(out_split, ref, atol=1e-2, rtol=1e-2), "split kernel mismatch vs reference"

    # bf16 storage halves HBM traffic on v6e/v7x; compute stays f32 inside the kernel.
    xb = x.astype(jnp.bfloat16)
    out_bf16 = jax.block_until_ready(se_block(xb, w1t, b1, w2t, b2))
    ref_bf16 = se_block_ref(xb.astype(jnp.float32), w1t, b1, w2t, b2)
    assert out_bf16.dtype == jnp.bfloat16
    assert jnp.allclose(out_bf16.astype(jnp.float32), ref_bf16, atol=3e-2, rtol=3e-2), \
        "bf16 kernel mismatch vs reference"

    print("KERNEL_OK")
</pallas_src>

<mosaic_0001>
module attributes {stable_mosaic.version = 11 : i64} {
  func.func @_se_fused_kernel(%arg0: i32, %arg1: memref<2x64x256xf32, #tpu.memory_space<vmem>>, %arg2: memref<64x8xf32, #tpu.memory_space<vmem>>, %arg3: memref<1x8xf32, #tpu.memory_space<vmem>>, %arg4: memref<8x64xf32, #tpu.memory_space<vmem>>, %arg5: memref<1x64xf32, #tpu.memory_space<vmem>>, %arg6: memref<2x64x256xf32, #tpu.memory_space<vmem>>) attributes {dimension_semantics = [#tpu.dimension_semantics<parallel>], iteration_bounds = array<i64: 1>, scalar_prefetch = 0 : i64, scratch_operands = 0 : i64, tpu.core_type = #tpu.core_type<tc>, window_params = [{transform_indices = @transform_0, window_bounds = array<i64: 2, 64, 256>}, {pipeline_mode = #tpu.pipeline_mode<synchronous>, transform_indices = @transform_1, window_bounds = array<i64: 64, 8>}, {pipeline_mode = #tpu.pipeline_mode<synchronous>, transform_indices = @transform_2, window_bounds = array<i64: 1, 8>}, {pipeline_mode = #tpu.pipeline_mode<synchronous>, transform_indices = @transform_3, window_bounds = array<i64: 8, 64>}, {pipeline_mode = #tpu.pipeline_mode<synchronous>, transform_indices = @transform_4, window_bounds = array<i64: 1, 64>}, {transform_indices = @transform_5, window_bounds = array<i64: 2, 64, 256>}]} {
    %c0 = arith.constant 0 : index
    %c0_0 = arith.constant 0 : index
    %c0_1 = arith.constant 0 : index
    %0 = vector.load %arg1[%c0, %c0_0, %c0_1] : memref<2x64x256xf32, #tpu.memory_space<vmem>>, vector<2x64x256xf32>
    %cst = arith.constant dense<0.000000e+00> : vector<2x64xf32>
    %1 = vector.multi_reduction <add>, %0, %cst [2] : vector<2x64x256xf32> to vector<2x64xf32>
    %cst_2 = arith.constant 3.906250e-03 : f32
    %2 = vector.broadcast %cst_2 : f32 to vector<2x64xf32>
    %3 = arith.mulf %1, %2 : vector<2x64xf32>
    %c0_3 = arith.constant 0 : index
    %c0_4 = arith.constant 0 : index
    %4 = vector.load %arg2[%c0_3, %c0_4] : memref<64x8xf32, #tpu.memory_space<vmem>>, vector<64x8xf32>
    %cst_5 = arith.constant dense<0.000000e+00> : vector<2x8xf32>
    %5 = tpu.matmul %3, %4, %cst_5 {dimension_numbers = #tpu.dot_dimension_numbers<[1], [0], [0], [1], [0, 0, 1, 1], [], []>} : vector<2x64xf32>, vector<64x8xf32>, vector<2x8xf32> -> vector<2x8xf32>
    %c0_6 = arith.constant 0 : index
    %c0_7 = arith.constant 0 : index
    %6 = vector.load %arg3[%c0_6, %c0_7] : memref<1x8xf32, #tpu.memory_space<vmem>>, vector<1x8xf32>
    %7 = vector.broadcast %6 : vector<1x8xf32> to vector<2x8xf32>
    %8 = arith.addf %5, %7 : vector<2x8xf32>
    %cst_8 = arith.constant 0.000000e+00 : f32
    %9 = vector.broadcast %cst_8 : f32 to vector<2x8xf32>
    %10 = arith.maximumf %8, %9 : vector<2x8xf32>
    %c0_9 = arith.constant 0 : index
    %c0_10 = arith.constant 0 : index
    %11 = vector.load %arg4[%c0_9, %c0_10] : memref<8x64xf32, #tpu.memory_space<vmem>>, vector<8x64xf32>
    %cst_11 = arith.constant dense<0.000000e+00> : vector<2x64xf32>
    %12 = tpu.matmul %10, %11, %cst_11 {dimension_numbers = #tpu.dot_dimension_numbers<[1], [0], [0], [1], [0, 0, 1, 1], [], []>} : vector<2x8xf32>, vector<8x64xf32>, vector<2x64xf32> -> vector<2x64xf32>
    %c0_12 = arith.constant 0 : index
    %c0_13 = arith.constant 0 : index
    %13 = vector.load %arg5[%c0_12, %c0_13] : memref<1x64xf32, #tpu.memory_space<vmem>>, vector<1x64xf32>
    %14 = vector.broadcast %13 : vector<1x64xf32> to vector<2x64xf32>
    %15 = arith.addf %12, %14 : vector<2x64xf32>
    %cst_14 = arith.constant 0.000000e+00 : f32
    %16 = vector.broadcast %cst_14 : f32 to vector<2x64xf32>
    %17 = arith.subf %16, %15 : vector<2x64xf32>
    %18 = math.exp %17 : vector<2x64xf32>
    %cst_15 = arith.constant 1.000000e+00 : f32
    %19 = vector.broadcast %cst_15 : f32 to vector<2x64xf32>
    %20 = arith.addf %19, %18 : vector<2x64xf32>
    %21 = tpu.reciprocal %20 {approx = true} : vector<2x64xf32> -> vector<2x64xf32>
    %22 = vector.shape_cast %21 : vector<2x64xf32> to vector<2x64x1xf32>
    %23 = vector.broadcast %22 : vector<2x64x1xf32> to vector<2x64x256xf32>
    %24 = arith.mulf %0, %23 : vector<2x64x256xf32>
    %c0_16 = arith.constant 0 : index
    %c0_17 = arith.constant 0 : index
    %c0_18 = arith.constant 0 : index
    %25 = vector.load %arg6[%c0_16, %c0_17, %c0_18] : memref<2x64x256xf32, #tpu.memory_space<vmem>>, vector<2x64x256xf32>
    tpu.vector_store %arg6[%c0_16, %c0_17, %c0_18], %24 {strides = array<i32>} : memref<2x64x256xf32, #tpu.memory_space<vmem>>, vector<2x64x256xf32>,
    return
  }
  func.func @transform_0(%arg0: i32) -> (i32, i32, i32) {
    %c0_i32 = arith.constant 0 : i32
    %c0_i32_0 = arith.constant 0 : i32
    %c0_i32_1 = arith.constant 0 : i32
    return %arg0, %c0_i32, %c0_i32_0 : i32, i32, i32
  }
  func.func @transform_1(%arg0: i32) -> (i32, i32) {
    %c0_i32 = arith.constant 0 : i32
    %c0_i32_0 = arith.constant 0 : i32
    %c0_i32_1 = arith.constant 0 : i32
    return %c0_i32, %c0_i32_0 : i32, i32
  }
  func.func @transform_2(%arg0: i32) -> (i32, i32) {
    %c0_i32 = arith.constant 0 : i32
    %c0_i32_0 = arith.constant 0 : i32
    %c0_i32_1 = arith.constant 0 : i32
    return %c0_i32, %c0_i32_0 : i32, i32
  }
  func.func @transform_3(%arg0: i32) -> (i32, i32) {
    %c0_i32 = arith.constant 0 : i32
    %c0_i32_0 = arith.constant 0 : i32
    %c0_i32_1 = arith.constant 0 : i32
    return %c0_i32, %c0_i32_0 : i32, i32
  }
  func.func @transform_4(%arg0: i32) -> (i32, i32) {
    %c0_i32 = arith.constant 0 : i32
    %c0_i32_0 = arith.constant 0 : i32
    %c0_i32_1 = arith.constant 0 : i32
    return %c0_i32, %c0_i32_0 : i32, i32
  }
  func.func @transform_5(%arg0: i32) -> (i32, i32, i32) {
    %c0_i32 = arith.constant 0 : i32
    %c0_i32_0 = arith.constant 0 : i32
    %c0_i32_1 = arith.constant 0 : i32
    return %arg0, %c0_i32, %c0_i32_0 : i32, i32, i32
  }
}

</mosaic_0001>

<bundles_post_ra>
// kernel: tpu_custom_call.1
= control target key start
LH: loop header
LB: loop body
LE: loop exit
PB: predicated region body
PF: predicated region fallthrough
CT: control target
= control target key end

     0   :  { %10 = vsyncpa [#allocation3], 0  ;;  %s746_s0 = inlined_call_operand.hbm [shape: f32[2,64,256], index: 0, kind: input, shape index: {}]   ;;  %s747_s1 = inlined_call_operand.vmem [shape: f32[64,8], index: 1, kind: input, shape index: {}]   ;;  %s748_s2 = inlined_call_operand.vmem [shape: f32[1,8], index: 2, kind: input, shape index: {}]   ;;  %s749_s3 = inlined_call_operand.vmem [shape: f32[8,64], index: 3, kind: input, shape index: {}]   ;;  %s750_s4 = inlined_call_operand.vmem [shape: f32[1,64], index: 4, kind: input, shape index: {}]   ;;  %s751_s5 = inlined_call_operand.hbm [shape: f32[2,64,256], index: 5, kind: output, shape index: {}]  }
   0x1   :  { %11 = vsyncpa [#allocation4], 0  ;;  %s16_s20 = sshll.u32 %s746_s0, 4  ;;  %s529_s21 = smov [#allocation2]   ;;  %s17_s20 = int_to_ptr.hbm [resolvable:$true] %s16_s20 }
   0x2   :  { %s18_s22 = sshll.u32 %s529_s21, 4  ;;  %s530_s23 = smov 256   ;;  %s19_s22 = int_to_ptr.vmem [resolvable:$true] %s18_s22 }
   0x3   :  { %s531_s24 = smov 16  }
   0x4   :  { %24 = dma.hbm_to_vmem [thread:$0]  %s17_s20, 4096, %s19_s22, [#allocation3], %s530_s23, %s530_s23, %s531_s24  }
   0x5   :  { %525 = dma.done.wait [#allocation3], 4096  }
   0x6   :  { %526 = vsyncadd [#allocation3], 4294963200  ;;  %v569_v0 = vld [vmem:[#allocation2 + $0x80] sm:$0xff]  ;;  %v571_v1 = vld [vmem:[#allocation2 + $0x88] sm:$0xff]  ;;  %vm166_vm0 = vcmask 130112   ;;  %vm170_vm1 = vcmask 195712  }
   0x7   :  { %v573_v2 = vld [vmem:[#allocation2] sm:$0xff]  ;;  %v93_v3 = vadd.f32 %v571_v1, %v569_v0  ;;  %v577_v4 = vld [vmem:[#allocation2 + $0x8] sm:$0xff]  ;;  %v587_v9 = vld [vmem:[#allocation2 + $0x90] sm:$0xff]  ;;  %vm174_vm2 = vcmask 261312   ;;  %vm178_vm3 = vcmask 326912   ;;  %vm182_vm4 = vcmask 392512  }
   0x8   :  { %v579_v5 = vld [vmem:[#allocation2 + $0x20] sm:$0xff]  ;;  %v581_v6 = vld [vmem:[#allocation2 + $0x28] sm:$0xff]  ;;  %v69_v7 = vadd.f32 %v577_v4, %v573_v2  ;;  %v589_v10 = vld [vmem:[#allocation2 + $0x98] sm:$0xff]  ;;  %vm186_vm5 = vcmask 458112   ;;  %vm190_vm6 = vcmask 523712   ;;  %vm207_vm7 = vcmask 1041409  }
   0x9   :  { %v75_v8 = vadd.f32 %v581_v6, %v579_v5  ;;  %94 = vadd.xlane.f32.xlu1 %v93_v3  ;;  %v591_v11 = vld [vmem:[#allocation2 + $0x10] sm:$0xff]  ;;  %v593_v12 = vld [vmem:[#allocation2 + $0x18] sm:$0xff]  ;;  %v595_v13 = vld [vmem:[#allocation2 + $0xa0] sm:$0xff]  ;;  %v96_v15 = vadd.f32 %v589_v10, %v587_v9  ;;  %vm209_vm8 = vcmask 523264   ;;  %vm238_vm9 = vcmask 64512   ;;  %s435_s21 = sshll.u32 %s751_s5, 4  ;;  %s436_s21 = int_to_ptr.hbm [resolvable:$true] %s435_s21 }
   0xa   :  { %70 = vadd.xlane.f32.xlu0 %v69_v7  ;;  %v597_v14 = vld [vmem:[#allocation2 + $0xa8] sm:$0xff]  ;;  %v72_v16 = vadd.f32 %v593_v12, %v591_v11  ;;  %v605_v18 = vld [vmem:[#allocation2 + $0xb0] sm:$0xff]  ;;  %v607_v19 = vld [vmem:[#allocation2 + $0xb8] sm:$0xff]  ;;  %v752_v7 = vlaneseq }
   0xb   :  { %76 = vadd.xlane.f32.xlu2 %v75_v8  ;;  %v99_v17 = vadd.f32 %v597_v14, %v595_v13  ;;  %v609_v20 = vld [vmem:[#allocation2 + $0x30] sm:$0xff]  ;;  %v611_v21 = vld [vmem:[#allocation2 + $0x38] sm:$0xff]  ;;  %v613_v22 = vld [vmem:[#allocation2 + $0x40] sm:$0xff]  ;;  %v102_v24 = vadd.f32 %v607_v19, %v605_v18 }
   0xc   :  { %v615_v23 = vld [vmem:[#allocation2 + $0x48] sm:$0xff]  ;;  %v78_v25 = vadd.f32 %v611_v21, %v609_v20  ;;  %v623_v27 = vld [vmem:[#allocation2 + $0x50] sm:$0xff]  ;;  %v625_v28 = vld [vmem:[#allocation2 + $0x58] sm:$0xff]  ;;  %v162_v8 = vand.u32 127, %v752_v7 }
   0xd   :  { %v81_v26 = vadd.f32 %v615_v23, %v613_v22  ;;  %v627_v29 = vld [vmem:[#allocation2 + $0xc0] sm:$0xff]  ;;  %v629_v30 = vld [vmem:[#allocation2 + $0xc8] sm:$0xff]  ;;  %v631_v31 = vld [vmem:[#allocation2 + $0xd0] sm:$0xff]  ;;  %v84_v33 = vadd.f32 %v625_v28, %v623_v27 }
   0xe   :  { %755 = vst [vmem:[#allocation8_spill] sm:$0xff] %v631_v31  ;;  %v633_v32 = vld [vmem:[#allocation2 + $0xd8] sm:$0xff]  ;;  %v105_v34 = vadd.f32 %v629_v30, %v627_v29  ;;  %v641_v36 = vld [vmem:[#allocation2 + $0xe0] sm:$0xff]  ;;  %v643_v37 = vld [vmem:[#allocation2 + $0xe8] sm:$0xff] }
   0xf   :  { %756 = vst [vmem:[#allocation9_spill] sm:$0xff] %v633_v32  ;;  %v108_v35 = vadd.f32 %v633_v32, %v631_v31  ;;  %v645_v38 = vld [vmem:[#allocation2 + $0x60] sm:$0xff]  ;;  %v647_v39 = vld [vmem:[#allocation2 + $0x68] sm:$0xff]  ;;  %v649_v40 = vld [vmem:[#allocation2 + $0x70] sm:$0xff]  ;;  %v111_v42 = vadd.f32 %v643_v37, %v641_v36 }
  0x10   :  { %v651_v41 = vld [vmem:[#allocation2 + $0x78] sm:$0xff]  ;;  %v87_v43 = vadd.f32 %v647_v39, %v645_v38  ;;  %v659_v45 = vld [vmem:[#allocation2 + $0xf0] sm:$0xff]  ;;  %v138_v53 = vld [vmem:[%s747_s1 + $0x28] sm:$0xff] }
  0x11   :  { %97 = vadd.xlane.f32.xlu1 %v96_v15  ;;  %v90_v44 = vadd.f32 %v651_v41, %v649_v40  ;;  %v661_v46 = vld [vmem:[#allocation2 + $0xf8] sm:$0xff]  ;;  %v139_v52 = vld [vmem:[%s747_s1 + $0x30] sm:$0xff]  ;;  %v137_v54 = vld [vmem:[%s747_s1 + $0x20] sm:$0xff] }
  0x12   :  { %73 = vadd.xlane.f32.xlu0 %v72_v16  ;;  %v114_v47 = vadd.f32 %v661_v46, %v659_v45  ;;  %v140_v48 = vld [vmem:[%s747_s1 + $0x38] sm:$0xff]  ;;  %v135_v59 = vld [vmem:[%s747_s1 + $0x10] sm:$0xff]  ;;  %v134_v60 = vld [vmem:[%s747_s1 + $0x8] sm:$0xff] }
  0x13   :  { %100 = vadd.xlane.f32.xlu2 %v99_v17  ;;  %220 = vmatpush.msra.mxu0 %v140_v48  ;;  %v136_v55 = vld [vmem:[%s747_s1 + $0x18] sm:$0xff]  ;;  %v133_v61 = vld [vmem:[%s747_s1] sm:$0xff] }
  0x15   :  { %221 = vmatpush.msra.mxu0 %v139_v52 }
  0x17   :  { %222 = vmatpush.msra.mxu0 %v138_v53 }
  0x19   :  { %103 = vadd.xlane.f32.xlu1 %v102_v24  ;;  %223 = vmatpush.msra.mxu0 %v137_v54  ;;  %v164_v24 = vadd.s32 4294967288, %v162_v8 }
  0x1a   :  { %79 = vadd.xlane.f32.xlu0 %v78_v25 }
  0x1b   :  { %82 = vadd.xlane.f32.xlu2 %v81_v26  ;;  %224 = vmatpush.msra.mxu0 %v136_v55 }
  0x1d   :  { %225 = vmatpush.msra.mxu0 %v135_v59 }
  0x1f   :  { %226 = vmatpush.msra.mxu0 %v134_v60  ;;  %v176_v60 = vadd.s32 4294967264, %v162_v8 }
  0x21   :  { %85 = vadd.xlane.f32.xlu1 %v84_v33  ;;  %227 = vmatpush.msra.mxu0 %v133_v61 }
  0x22   :  { %106 = vadd.xlane.f32.xlu0 %v105_v34 }
  0x23   :  { %109 = vadd.xlane.f32.xlu2 %v108_v35  ;;  %v168_v35 = vadd.s32 4294967280, %v162_v8 }
  0x29   :  { %112 = vadd.xlane.f32.xlu1 %v111_v42 }
  0x2a   :  { %88 = vadd.xlane.f32.xlu0 %v87_v43 }
  0x2b   :  { %91 = vadd.xlane.f32.xlu2 %v90_v44  ;;  %v172_v44 = vadd.s32 4294967272, %v162_v8 }
  0x32   :  { %115 = vadd.xlane.f32.xlu0 %v114_v47 }
  0x7c   :  { %v95_v49 = vpop.xlane.xlu1 %94 }
  0x7d   :  { %v71_v50 = vpop.xlane.xlu0 %70  ;;  %v125_v26 = vmul.f32 0.00390625, %v95_v49 }
  0x7e   :  { %v77_v51 = vpop.xlane.xlu2 %76  ;;  %v117_v33 = vmul.f32 0.00390625, %v71_v50 }
  0x7f   :  { %v119_v42 = vmul.f32 0.00390625, %v77_v51  ;;  %v192_v52 = vperm.slane %v125_v26, %v162_v8 }
  0x80   :  { %v163_v53 = vperm.slane %v117_v33, %v162_v8 }
  0x81   :  { %v169_v59 = vperm.slane %v119_v42, %v168_v35 }
  0x84   :  { %v98_v56 = vpop.xlane.xlu1 %97 }
  0x85   :  { %v74_v57 = vpop.xlane.xlu0 %73  ;;  %v126_v34 = vmul.f32 0.00390625, %v98_v56  ;;  %v180_v56 = vadd.s32 4294967256, %v162_v8 }
  0x86   :  { %v101_v58 = vpop.xlane.xlu2 %100  ;;  %v118_v25 = vmul.f32 0.00390625, %v74_v57 }
  0x87   :  { %v127_v48 = vmul.f32 0.00390625, %v101_v58  ;;  %v193_v54 = vperm.slane %v126_v34, %v164_v24 }
  0x88   :  { %v165_v43 = vperm.slane %v118_v25, %v164_v24 }
  0x89   :  { %v195_v32 = vperm.slane %v127_v48, %v168_v35  ;;  %v194_v26 = vsel %vm166_vm0, %v193_v54, %v192_v52 }
  0x8a   :  { %v167_v49 = vsel %vm166_vm0, %v165_v43, %v163_v53 }
  0x8b   :  { %v196_v35 = vsel %vm170_vm1, %v195_v32, %v194_v26  ;;  %v757_v26 = vlaneseq }
  0x8c   :  { %v104_v62 = vpop.xlane.xlu1 %103 }
  0x8d   :  { %v80_v63 = vpop.xlane.xlu0 %79  ;;  %v128_v55 = vmul.f32 0.00390625, %v104_v62 }
  0x8e   :  { %v83_v3 = vpop.xlane.xlu2 %82  ;;  %v120_v47 = vmul.f32 0.00390625, %v80_v63  ;;  %v184_v63 = vadd.s32 4294967248, %v162_v8 }
  0x8f   :  { %v121_v61 = vmul.f32 0.00390625, %v83_v3  ;;  %v197_v24 = vperm.slane %v128_v55, %v172_v44  ;;  %v171_v3 = vsel %vm170_vm1, %v169_v59, %v167_v49 }
  0x90   :  { %v173_v50 = vperm.slane %v120_v47, %v172_v44 }
  0x91   :  { %v198_v53 = vsel %vm174_vm2, %v197_v24, %v196_v35  ;;  %v269_v24 = vshrl.u32 %v757_v26, 7 }
  0x92   :  { %v175_v42 = vsel %vm174_vm2, %v173_v50, %v171_v3 }
  0x93   :  { %454 = vset.pattern.permute.xlu1 %v269_v24  ;;  %v276_v3 = vadd.s32 8, %v269_v24 }
  0x94   :  { %v86_v15 = vpop.xlane.xlu1 %85 }
  0x95   :  { %v107_v16 = vpop.xlane.xlu0 %106  ;;  %v122_v51 = vmul.f32 0.00390625, %v86_v15  ;;  %v188_v15 = vadd.s32 4294967240, %v162_v8  ;;  %455 = vset.pattern.permute.xlu2 %v276_v3 }
  0x96   :  { %v110_v17 = vpop.xlane.xlu2 %109  ;;  %v129_v7 = vmul.f32 0.00390625, %v107_v16  ;;  %v177_v16 = vperm.slane %v121_v61, %v176_v60 }
  0x97   :  { %v130_v62 = vmul.f32 0.00390625, %v110_v17  ;;  %v181_v43 = vperm.slane %v122_v51, %v180_v56  ;;  %v471_v51 = vld [vmem:[%s748_s2] ss:$0 sm:$0xff]  ;;  %s532_s2 = smov [#allocation5]  }
  0x98   :  { %v199_v33 = vperm.slane %v129_v7, %v176_v60  ;;  %v179_v17 = vsel %vm178_vm3, %v177_v16, %v175_v42  ;;  %v472_v16 = vld [vmem:[%s750_s4] ss:$0 sm:$0xff] }
  0x99   :  { %v201_v52 = vperm.slane %v130_v62, %v180_v56  ;;  %v183_v55 = vsel %vm182_vm4, %v181_v43, %v179_v17  ;;  %v233_v56 = vld [vmem:[%s749_s3] sm:$0xff]  ;;  %v282_v62 = vadd.s32 16, %v269_v24  ;;  %s433_s3 = sshll.u32 %s532_s2, 4  ;;  %s434_s3 = int_to_ptr.vmem [resolvable:$true] %s433_s3 }
  0x9a   :  { %v200_v44 = vsel %vm178_vm3, %v199_v33, %v198_v53  ;;  %257 = vmatpush.msra.mxu1 %v233_v56  ;;  %v288_v53 = vadd.s32 24, %v269_v24 }
  0x9b   :  { %v202_v8 = vsel %vm182_vm4, %v201_v52, %v200_v44  ;;  %456 = vset.pattern.permute.xlu0 %v282_v62  ;;  %v294_v52 = vadd.s32 32, %v269_v24  ;;  %v306_v44 = vadd.s32 48, %v269_v24 }
  0x9c   :  { %v113_v25 = vpop.xlane.xlu1 %112 }
  0x9d   :  { %v89_v57 = vpop.xlane.xlu0 %88  ;;  %v131_v34 = vmul.f32 0.00390625, %v113_v25 }
  0x9e   :  { %v123_v31 = vmul.f32 0.00390625, %v89_v57  ;;  %v92_v58 = vpop.xlane.xlu2 %91 }
  0x9f   :  { %v124_v47 = vmul.f32 0.00390625, %v92_v58  ;;  %v203_v54 = vperm.slane %v131_v34, %v184_v63 }
  0xa0   :  { %v185_v48 = vperm.slane %v123_v31, %v184_v63 }
  0xa1   :  { %v189_v59 = vperm.slane %v124_v47, %v188_v15  ;;  %v204_v32 = vsel %vm186_vm5, %v203_v54, %v202_v8  ;;  %v300_v54 = vadd.s32 40, %v269_v24 }
  0xa2   :  { %v187_v61 = vsel %vm186_vm5, %v185_v48, %v183_v55 }
  0xa3   :  { %v191_v31 = vsel %vm190_vm6, %v189_v59, %v187_v61 }
  0xa5   :  { %v116_v7 = vpop.xlane.xlu0 %115 }
  0xa6   :  { %v132_v60 = vmul.f32 0.00390625, %v116_v7  ;;  %v312_v7 = vadd.s32 56, %v269_v24 }
  0xa8   :  { %v205_v57 = vperm.slane %v132_v60, %v188_v15 }
  0xaa   :  { %v206_v49 = vsel %vm190_vm6, %v205_v57, %v204_v32 }
  0xab   :  { %v208_v50 = vsel %vm207_vm7, %v206_v49, %v191_v31 }
  0xac   :  { %448 = vmatmul.msk.f32.vlgmr.msra.gmra.mxu0 %vm209_vm8, %v208_v50 }
 0x129   :  { %v229_v25 = vpop.f32.mrf.mxu0 }
 0x12a   :  { %v230_v63 = vadd.f32 %v471_v51, %v229_v25 }
 0x12c   :  { %v232_v58 = vmax.f32 %v230_v63, 0.0 }
 0x12e   :  { %449 = vmatmul.msk.f32.vlgmr.msra.gmra.mxu1 %vm238_vm9, %v232_v58 }
 0x1ab   :  { %v259_v33 = vpop.f32.mrf.mxu1 }
 0x1ac   :  { %v260_v34 = vadd.f32 %v472_v16, %v259_v33 }
 0x1ae   :  { %v262_v42 = vsub.f32 0.0, %v260_v34  ;;  %v759_v34 = vld [vmem:[#allocation9_spill] sm:$0xff] }
 0x1b0   :  { %v263_v43 = vmul.f32 1.442695, %v262_v42 }
 0x1b2   :  { %473 = vpow2.f32 %v263_v43 }
 0x1b8   :  { %v474_v15 = vpop.eup %473 }
 0x1b9   :  { %v265_v47 = vadd.f32 1.0, %v474_v15 }
 0x1bb   :  { %475 = vrcp.f32 %v265_v47 }
 0x1c1   :  { %v476_v35 = vpop.eup %475 }
 0x1c2   :  { %v267_v48 = vperm.slane %v476_v35, 0  ;;  %v316_v17 = vperm.slane %v476_v35, 1 }
 0x1c4   :  { %284 = vperm.xlu0 %456, %v267_v48   ;;  %278 = vperm.xlu2 %455, %v267_v48  }
 0x1c5   :  { %272 = vperm.xlu1 %454, %v267_v48  }
 0x1cc   :  { %463 = vset.pattern.permute.xlu0 %v276_v3  ;;  %457 = vset.pattern.permute.xlu2 %v288_v53 }
 0x1cd   :  { %458 = vset.pattern.permute.xlu1 %v294_v52 }
 0x1d4   :  { %327 = vperm.xlu0 %463, %v316_v17   ;;  %290 = vperm.xlu2 %457, %v267_v48  }
 0x1d5   :  { %296 = vperm.xlu1 %458, %v267_v48  }
 0x1dc   :  { %468 = vset.pattern.permute.xlu0 %v306_v44  ;;  %459 = vset.pattern.permute.xlu2 %v300_v54 }
 0x1dd   :  { %460 = vset.pattern.permute.xlu1 %v306_v44 }
 0x1e4   :  { %357 = vperm.xlu0 %468, %v316_v17   ;;  %302 = vperm.xlu2 %459, %v267_v48  }
 0x1e5   :  { %308 = vperm.xlu1 %460, %v267_v48  }
 0x1ec   :  { %461 = vset.pattern.permute.xlu2 %v312_v7  ;;  %470 = vset.pattern.permute.xlu0 %v312_v7 }
 0x1ed   :  { %462 = vset.pattern.permute.xlu1 %v269_v24 }
 0x1f4   :  { %314 = vperm.xlu2 %461, %v267_v48  }
 0x1f5   :  { %321 = vperm.xlu1 %462, %v316_v17  }
 0x1fc   :  { %464 = vset.pattern.permute.xlu2 %v282_v62 }
 0x1fd   :  { %465 = vset.pattern.permute.xlu1 %v288_v53 }
 0x204   :  { %333 = vperm.xlu2 %464, %v316_v17  }
 0x205   :  { %339 = vperm.xlu1 %465, %v316_v17  }
 0x20c   :  { %466 = vset.pattern.permute.xlu2 %v294_v52 }
 0x20d   :  { %467 = vset.pattern.permute.xlu1 %v300_v54 }
 0x214   :  { %345 = vperm.xlu2 %466, %v316_v17  }
 0x215   :  { %351 = vperm.xlu1 %467, %v316_v17  }
 0x21c   :  { %469 = vset.pattern.permute.xlu2 %v312_v7 }
 0x21e   :  { %v279_v55 = vpop.permute.xlu2 %278 }
 0x21f   :  { %v367_v59 = vmul.f32 %v279_v55, %v591_v11  ;;  %v368_v60 = vmul.f32 %v279_v55, %v593_v12 }
 0x221   :  { %399 = vst [vmem:[#allocation5 + $0x10] sm:$0xff] %v367_v59 }
 0x222   :  { %400 = vst [vmem:[#allocation5 + $0x18] sm:$0xff] %v368_v60 }
 0x224   :  { %363 = vperm.xlu2 %469, %v316_v17  }
 0x22e   :  { %v291_v61 = vpop.permute.xlu2 %290 }
 0x22f   :  { %v371_v8 = vmul.f32 %v291_v61, %v609_v20  ;;  %v372_v57 = vmul.f32 %v291_v61, %v611_v21 }
 0x231   :  { %403 = vst [vmem:[#allocation5 + $0x30] sm:$0xff] %v371_v8 }
 0x232   :  { %404 = vst [vmem:[#allocation5 + $0x38] sm:$0xff] %v372_v57 }
 0x236   :  { %v285_v32 = vpop.permute.xlu0 %284 }
 0x237   :  { %v369_v31 = vmul.f32 %v285_v32, %v579_v5  ;;  %v370_v49 = vmul.f32 %v285_v32, %v581_v6  ;;  %v273_v50 = vpop.permute.xlu1 %272 }
 0x238   :  { %v365_v11 = vmul.f32 %v273_v50, %v573_v2  ;;  %v366_v12 = vmul.f32 %v273_v50, %v577_v4 }
 0x239   :  { %401 = vst [vmem:[#allocation5 + $0x20] sm:$0xff] %v369_v31 }
 0x23a   :  { %402 = vst [vmem:[#allocation5 + $0x28] sm:$0xff] %v370_v49 }
 0x23b   :  { %397 = vst [vmem:[#allocation5] sm:$0xff] %v365_v11 }
 0x23c   :  { %398 = vst [vmem:[#allocation5 + $0x8] sm:$0xff] %v366_v12 }
 0x23e   :  { %v303_v56 = vpop.permute.xlu2 %302 }
 0x23f   :  { %v375_v20 = vmul.f32 %v303_v56, %v623_v27  ;;  %v376_v21 = vmul.f32 %v303_v56, %v625_v28 }
 0x241   :  { %407 = vst [vmem:[#allocation5 + $0x50] sm:$0xff] %v375_v20 }
 0x242   :  { %408 = vst [vmem:[#allocation5 + $0x58] sm:$0xff] %v376_v21 }
 0x246   :  { %v328_v51 = vpop.permute.xlu0 %327 }
 0x247   :  { %v383_v5 = vmul.f32 %v328_v51, %v587_v9  ;;  %v384_v6 = vmul.f32 %v328_v51, %v589_v10  ;;  %v297_v25 = vpop.permute.xlu1 %296 }
 0x248   :  { %v373_v2 = vmul.f32 %v297_v25, %v613_v22  ;;  %v374_v4 = vmul.f32 %v297_v25, %v615_v23 }
 0x249   :  { %415 = vst [vmem:[#allocation5 + $0x90] sm:$0xff] %v383_v5 }
 0x24a   :  { %416 = vst [vmem:[#allocation5 + $0x98] sm:$0xff] %v384_v6 }
 0x24b   :  { %405 = vst [vmem:[#allocation5 + $0x40] sm:$0xff] %v373_v2 }
 0x24c   :  { %406 = vst [vmem:[#allocation5 + $0x48] sm:$0xff] %v374_v4 }
 0x24e   :  { %v315_v63 = vpop.permute.xlu2 %314 }
 0x24f   :  { %v379_v27 = vmul.f32 %v315_v63, %v649_v40  ;;  %v380_v28 = vmul.f32 %v315_v63, %v651_v41 }
 0x251   :  { %411 = vst [vmem:[#allocation5 + $0x70] sm:$0xff] %v379_v27 }
 0x252   :  { %412 = vst [vmem:[#allocation5 + $0x78] sm:$0xff] %v380_v28 }
 0x256   :  { %v358_v58 = vpop.permute.xlu0 %357 }
 0x257   :  { %v393_v9 = vmul.f32 %v358_v58, %v641_v36  ;;  %v394_v10 = vmul.f32 %v358_v58, %v643_v37  ;;  %v309_v26 = vpop.permute.xlu1 %308 }
 0x258   :  { %v377_v22 = vmul.f32 %v309_v26, %v645_v38  ;;  %v378_v23 = vmul.f32 %v309_v26, %v647_v39 }
 0x259   :  { %425 = vst [vmem:[#allocation5 + $0xe0] sm:$0xff] %v393_v9 }
 0x25a   :  { %426 = vst [vmem:[#allocation5 + $0xe8] sm:$0xff] %v394_v10 }
 0x25b   :  { %409 = vst [vmem:[#allocation5 + $0x60] sm:$0xff] %v377_v22 }
 0x25c   :  { %410 = vst [vmem:[#allocation5 + $0x68] sm:$0xff] %v378_v23 }
 0x25e   :  { %v334_v24 = vpop.permute.xlu2 %333 }
 0x25f   :  { %v385_v40 = vmul.f32 %v334_v24, %v595_v13  ;;  %v386_v41 = vmul.f32 %v334_v24, %v597_v14 }
 0x261   :  { %417 = vst [vmem:[#allocation5 + $0xa0] sm:$0xff] %v385_v40 }
 0x262   :  { %418 = vst [vmem:[#allocation5 + $0xa8] sm:$0xff] %v386_v41 }
 0x267   :  { %v322_v62 = vpop.permute.xlu1 %321 }
 0x268   :  { %v381_v36 = vmul.f32 %v322_v62, %v569_v0  ;;  %v382_v37 = vmul.f32 %v322_v62, %v571_v1 }
 0x26a   :  { %413 = vst [vmem:[#allocation5 + $0x80] sm:$0xff] %v381_v36 }
 0x26b   :  { %414 = vst [vmem:[#allocation5 + $0x88] sm:$0xff] %v382_v37 }
 0x26e   :  { %v346_v38 = vpop.permute.xlu2 %345 }
 0x26f   :  { %v389_v39 = vmul.f32 %v346_v38, %v627_v29  ;;  %v390_v3 = vmul.f32 %v346_v38, %v629_v30  ;;  %v758_v30 = vld [vmem:[#allocation8_spill] sm:$0xff] }
 0x271   :  { %421 = vst [vmem:[#allocation5 + $0xc0] sm:$0xff] %v389_v39 }
 0x272   :  { %422 = vst [vmem:[#allocation5 + $0xc8] sm:$0xff] %v390_v3 }
 0x277   :  { %v340_v16 = vpop.permute.xlu1 %339 }
 0x278   :  { %v387_v13 = vmul.f32 %v340_v16, %v605_v18  ;;  %v388_v14 = vmul.f32 %v340_v16, %v607_v19 }
 0x27a   :  { %419 = vst [vmem:[#allocation5 + $0xb0] sm:$0xff] %v387_v13 }
 0x27b   :  { %420 = vst [vmem:[#allocation5 + $0xb8] sm:$0xff] %v388_v14 }
 0x27e   :  { %v364_v33 = vpop.permute.xlu2 %363 }
 0x27f   :  { %v395_v0 = vmul.f32 %v364_v33, %v659_v45  ;;  %v396_v1 = vmul.f32 %v364_v33, %v661_v46 }
 0x281   :  { %427 = vst [vmem:[#allocation5 + $0xf0] sm:$0xff] %v395_v0 }
 0x282   :  { %428 = vst [vmem:[#allocation5 + $0xf8] sm:$0xff] %v396_v1 }
 0x287   :  { %v352_v29 = vpop.permute.xlu1 %351 }
 0x288   :  { %v391_v18 = vmul.f32 %v352_v29, %v758_v30  ;;  %v392_v19 = vmul.f32 %v352_v29, %v759_v34 }
 0x28a   :  { %423 = vst [vmem:[#allocation5 + $0xd0] sm:$0xff] %v391_v18 }
 0x28b   :  { %424 = vst [vmem:[#allocation5 + $0xd8] sm:$0xff] %v392_v19 }
 0x28c   :  { %441 = dma.vmem_to_hbm [thread:$0]  %s434_s3, 4096, %s436_s21, [#allocation4], %s530_s23, %s530_s23, %s531_s24  }
 0x28d   :  { %527 = dma.done.wait [#allocation4], 4096  }
 0x28e   :  { %528 = vsyncadd [#allocation4], 4294963200 }
 0x28f   :  { %446 = vsyncpa [#allocation3], 1 }
 0x290   :  { %447 = vsyncpa [#allocation4], 1 }

</bundles_post_ra>
